<compile_context>
chip_gen: v5e
topology: v5e:2x2
jax: 0.10.0
libtpu: 0.0.40
codegen_flags: <defaults>
</compile_context>

<pallas_src>
import functools
import math

import jax
import jax.numpy as jnp
from jax.experimental import pallas as pl
from jax.experimental.pallas import tpu as pltpu


def _patch_merge_kernel(x_ref, g_ref, b_ref, w_ref, o_ref, *, eps):
    # x_ref: (tr, 2, Wh, 2C)  input tile, hp-parity kept as its own axis
    # g_ref: (2, 2C)          LayerNorm gamma, permuted & split by hp
    # b_ref: (2, 2C)          LayerNorm beta,  permuted & split by hp
    # w_ref: (2, 2C, D2)      reduction weight, permuted & split by hp
    # o_ref: (tr, Wh, D2)     output tile
    tr, _, wh, c2 = x_ref.shape
    d2 = o_ref.shape[-1]
    rows = tr * wh

    x = x_ref[...]                                          # input dtype
    xa = x[:, 0].reshape(rows, c2).astype(jnp.float32)      # hp=0 -> [x0 | x2]
    xb = x[:, 1].reshape(rows, c2).astype(jnp.float32)      # hp=1 -> [x1 | x3]

    # LayerNorm statistics over the joint 4C channels (f32, biased variance).
    inv_n = 1.0 / (2.0 * c2)                                # 1 / (4C)
    mean = (jnp.sum(xa, axis=-1, keepdims=True)
            + jnp.sum(xb, axis=-1, keepdims=True)) * inv_n
    xac = xa - mean
    xbc = xb - mean
    var = (jnp.sum(xac * xac, axis=-1, keepdims=True)
           + jnp.sum(xbc * xbc, axis=-1, keepdims=True)) * inv_n
    inv = jax.lax.rsqrt(var + eps)

    g = g_ref[...].astype(jnp.float32)                      # (2, 2C)
    b = b_ref[...].astype(jnp.float32)                      # (2, 2C)

    # Feed the MXU in the weight's dtype (no in-kernel f32 upcast of W).
    mxu_dtype = w_ref.dtype
    xna = (xac * inv * g[0:1, :] + b[0:1, :]).astype(mxu_dtype)
    xnb = (xbc * inv * g[1:2, :] + b[1:2, :]).astype(mxu_dtype)

    # Bias-free reduction, split over the two h-parity halves:
    #   y = xn_full @ W  ==  xna @ W[hp=0] + xnb @ W[hp=1]
    y = jnp.dot(xna, w_ref[0], preferred_element_type=jnp.float32)
    y = y + jnp.dot(xnb, w_ref[1], preferred_element_type=jnp.float32)

    # TODO(synk): quantization branches of QLinear/QAct (quant=True) are not
    # modeled; with quant=False they are exact identity / plain linear.
    o_ref[...] = y.reshape(tr, wh, d2).astype(o_ref.dtype)


def patch_merge(x, gamma, beta, w, *, eps=1e-5, mxu_dtype=None):
    """x: [B, H, W, C] channels-last.  Returns [B, H//2, W//2, 2C]."""
    B, H, W, C = x.shape
    assert H % 2 == 0 and W % 2 == 0
    D4, D2 = 4 * C, 2 * C
    assert gamma.shape == (D4,) and beta.shape == (D4,) and w.shape == (D4, D2)

    Hh, Wh = H // 2, W // 2
    R = B * Hh                    # (batch, h/2) fused row-group axis
    C2 = 2 * C
    mxu_dtype = x.dtype if mxu_dtype is None else mxu_dtype

    # --- free view: no HBM gather/concat; kernel reads x directly ---
    # x[b, 2i+hp, 2j+wp, c] == x4[b*Hh + i, hp, j, wp*C + c]
    x4 = x.reshape(R, 2, Wh, C2)

    # --- one-time host-side permutation of parameters to the kernel's channel
    # order: hp=0 half sees [x0 | x2], hp=1 half sees [x1 | x3].  LayerNorm and
    # the bias-free linear are invariant under a matched channel permutation.
    ga = jnp.concatenate([gamma[0:C], gamma[2 * C:3 * C]])
    gb = jnp.concatenate([gamma[C:2 * C], gamma[3 * C:4 * C]])
    ba = jnp.concatenate([beta[0:C], beta[2 * C:3 * C]])
    bb = jnp.concatenate([beta[C:2 * C], beta[3 * C:4 * C]])
    wa = jnp.concatenate([w[0:C], w[2 * C:3 * C]], axis=0)
    wb = jnp.concatenate([w[C:2 * C], w[3 * C:4 * C]], axis=0)
    g2 = jnp.stack([ga, gb]).astype(jnp.float32)            # (2, 2C)
    b2 = jnp.stack([ba, bb]).astype(jnp.float32)            # (2, 2C)
    w2 = jnp.stack([wa, wb]).astype(mxu_dtype)              # (2, 2C, D2)

    # --- row-tile selection: ~512 merged rows per grid step, VMEM-budgeted,
    # with at least 2 grid steps so both v7x TensorCores get work.
    itemsize_x = jnp.dtype(x.dtype).itemsize
    itemsize_w = jnp.dtype(mxu_dtype).itemsize
    target_rows = 512
    tr = max(1, pl.cdiv(target_rows, Wh))
    tr = min(tr, R)
    if R >= 2:
        tr = min(tr, pl.cdiv(R, 2))

    def _vmem_need(tr_):
        rows = tr_ * Wh
        in_b = 2 * rows * D4 * itemsize_x                   # double-buffered in
        out_b = 2 * rows * D2 * itemsize_x                  # double-buffered out
        w_b = 2 * (2 * C2 * D2 * itemsize_w + 2 * 2 * C2 * 4)
        tmp_b = rows * (D4 * 4 + D4 * itemsize_w + D2 * 4)  # f32/xn temporaries
        return in_b + out_b + w_b + tmp_b

    vmem_budget = 24 * 1024 * 1024
    while tr > 1 and _vmem_need(tr) > vmem_budget:
        tr = max(1, tr // 2)

    grid = (pl.cdiv(R, tr),)
    vmem_limit = int(min(48 * 1024 * 1024,
                         max(32 * 1024 * 1024, 2 * _vmem_need(tr))))

    kernel = functools.partial(_patch_merge_kernel, eps=eps)

    out3 = pl.pallas_call(
        kernel,
        out_shape=jax.ShapeDtypeStruct((R, Wh, D2), x.dtype),
        grid_spec=pltpu.PrefetchScalarGridSpec(
            num_scalar_prefetch=0,
            grid=grid,
            in_specs=[
                # Trailing block dims equal the full array dims -> no (8,128)
                # divisibility constraints even for small C / odd Wh.
                pl.BlockSpec((tr, 2, Wh, C2), lambda i: (i, 0, 0, 0)),
                pl.BlockSpec((2, C2), lambda i: (0, 0)),
                pl.BlockSpec((2, C2), lambda i: (0, 0)),
                pl.BlockSpec((2, C2, D2), lambda i: (0, 0, 0)),
            ],
            out_specs=pl.BlockSpec((tr, Wh, D2), lambda i: (i, 0, 0)),
        ),
        compiler_params=pltpu.CompilerParams(
            dimension_semantics=("parallel",),
            vmem_limit_bytes=vmem_limit,
        ),
    )(x4, g2, b2, w2)

    return out3.reshape(B, Hh, Wh, D2)


def _reference(x, gamma, beta, w, eps=1e-5):
    x0 = x[:, 0::2, 0::2, :]
    x1 = x[:, 1::2, 0::2, :]
    x2 = x[:, 0::2, 1::2, :]
    x3 = x[:, 1::2, 1::2, :]
    xm = jnp.concatenate([x0, x1, x2, x3], axis=-1)
    mean = jnp.mean(xm, axis=-1, keepdims=True)
    var = jnp.mean((xm - mean) ** 2, axis=-1, keepdims=True)
    xn = (xm - mean) * jax.lax.rsqrt(var + eps) * gamma + beta
    return xn @ w


if __name__ == "__main__":
    key = jax.random.PRNGKey(0)
    k_x, k_g, k_b, k_w = jax.random.split(key, 4)

    # Small shapes consistent with the module: dim (C) = 4, spatial 16x16, batch 2.
    B, H, W, C = 2, 16, 16, 4
    D4, D2 = 4 * C, 2 * C

    x = jax.random.normal(k_x, (B, H, W, C), dtype=jnp.float32)
    gamma = 1.0 + 0.1 * jax.random.normal(k_g, (D4,), dtype=jnp.float32)
    beta = 0.1 * jax.random.normal(k_b, (D4,), dtype=jnp.float32)
    bound = 1.0 / math.sqrt(D4)
    w = jax.random.uniform(k_w, (D4, D2), minval=-bound, maxval=bound,
                           dtype=jnp.float32)

    out = jax.jit(patch_merge)(x, gamma, beta, w)
    out = jax.block_until_ready(out)

    ref = _reference(x, gamma, beta, w)
    assert out.shape == (B, H // 2, W // 2, D2), out.shape
    max_err = float(jnp.max(jnp.abs(out - ref)))
    assert jnp.allclose(out, ref, atol=5e-4, rtol=5e-4), max_err

    print("KERNEL_OK")
</pallas_src>

<mosaic_0001>
module attributes {stable_mosaic.version = 11 : i64} {
  func.func @_patch_merge_kernel(%arg0: i32, %arg1: memref<8x2x8x8xf32, #tpu.memory_space<vmem>>, %arg2: memref<2x8xf32, #tpu.memory_space<vmem>>, %arg3: memref<2x8xf32, #tpu.memory_space<vmem>>, %arg4: memref<2x8x8xf32, #tpu.memory_space<vmem>>, %arg5: memref<8x8x8xf32, #tpu.memory_space<vmem>>) attributes {dimension_semantics = [#tpu.dimension_semantics<parallel>], iteration_bounds = array<i64: 2>, scalar_prefetch = 0 : i64, scratch_operands = 0 : i64, tpu.core_type = #tpu.core_type<tc>, window_params = [{transform_indices = @transform_0, window_bounds = array<i64: 8, 2, 8, 8>}, {pipeline_mode = #tpu.pipeline_mode<synchronous>, transform_indices = @transform_1, window_bounds = array<i64: 2, 8>}, {pipeline_mode = #tpu.pipeline_mode<synchronous>, transform_indices = @transform_2, window_bounds = array<i64: 2, 8>}, {pipeline_mode = #tpu.pipeline_mode<synchronous>, transform_indices = @transform_3, window_bounds = array<i64: 2, 8, 8>}, {transform_indices = @transform_4, window_bounds = array<i64: 8, 8, 8>}]} {
    %c0 = arith.constant 0 : index
    %c0_0 = arith.constant 0 : index
    %c0_1 = arith.constant 0 : index
    %c0_2 = arith.constant 0 : index
    %0 = vector.load %arg1[%c0, %c0_0, %c0_1, %c0_2] : memref<8x2x8x8xf32, #tpu.memory_space<vmem>>, vector<8x2x8x8xf32>
    %1 = vector.extract_strided_slice %0 {offsets = [0, 0, 0, 0], sizes = [8, 1, 8, 8], strides = [1, 1, 1, 1]} : vector<8x2x8x8xf32> to vector<8x1x8x8xf32>
    %2 = vector.shape_cast %1 : vector<8x1x8x8xf32> to vector<8x8x8xf32>
    %3 = vector.shape_cast %2 : vector<8x8x8xf32> to vector<64x8xf32>
    %4 = vector.extract_strided_slice %0 {offsets = [0, 1, 0, 0], sizes = [8, 1, 8, 8], strides = [1, 1, 1, 1]} : vector<8x2x8x8xf32> to vector<8x1x8x8xf32>
    %5 = vector.shape_cast %4 : vector<8x1x8x8xf32> to vector<8x8x8xf32>
    %6 = vector.shape_cast %5 : vector<8x8x8xf32> to vector<64x8xf32>
    %cst = arith.constant dense<0.000000e+00> : vector<64xf32>
    %7 = vector.multi_reduction <add>, %3, %cst [1] : vector<64x8xf32> to vector<64xf32>
    %8 = vector.shape_cast %7 : vector<64xf32> to vector<64x1xf32>
    %cst_3 = arith.constant dense<0.000000e+00> : vector<64xf32>
    %9 = vector.multi_reduction <add>, %6, %cst_3 [1] : vector<64x8xf32> to vector<64xf32>
    %10 = vector.shape_cast %9 : vector<64xf32> to vector<64x1xf32>
    %11 = arith.addf %8, %10 : vector<64x1xf32>
    %cst_4 = arith.constant 6.250000e-02 : f32
    %12 = vector.broadcast %cst_4 : f32 to vector<64x1xf32>
    %13 = arith.mulf %11, %12 : vector<64x1xf32>
    %14 = vector.broadcast %13 : vector<64x1xf32> to vector<64x8xf32>
    %15 = arith.subf %3, %14 : vector<64x8xf32>
    %16 = vector.broadcast %13 : vector<64x1xf32> to vector<64x8xf32>
    %17 = arith.subf %6, %16 : vector<64x8xf32>
    %18 = arith.mulf %15, %15 : vector<64x8xf32>
    %cst_5 = arith.constant dense<0.000000e+00> : vector<64xf32>
    %19 = vector.multi_reduction <add>, %18, %cst_5 [1] : vector<64x8xf32> to vector<64xf32>
    %20 = vector.shape_cast %19 : vector<64xf32> to vector<64x1xf32>
    %21 = arith.mulf %17, %17 : vector<64x8xf32>
    %cst_6 = arith.constant dense<0.000000e+00> : vector<64xf32>
    %22 = vector.multi_reduction <add>, %21, %cst_6 [1] : vector<64x8xf32> to vector<64xf32>
    %23 = vector.shape_cast %22 : vector<64xf32> to vector<64x1xf32>
    %24 = arith.addf %20, %23 : vector<64x1xf32>
    %cst_7 = arith.constant 6.250000e-02 : f32
    %25 = vector.broadcast %cst_7 : f32 to vector<64x1xf32>
    %26 = arith.mulf %24, %25 : vector<64x1xf32>
    %cst_8 = arith.constant 9.99999974E-6 : f32
    %27 = vector.broadcast %cst_8 : f32 to vector<64x1xf32>
    %28 = arith.addf %26, %27 : vector<64x1xf32>
    %29 = math.rsqrt %28 : vector<64x1xf32>
    %c0_9 = arith.constant 0 : index
    %c0_10 = arith.constant 0 : index
    %30 = vector.load %arg2[%c0_9, %c0_10] : memref<2x8xf32, #tpu.memory_space<vmem>>, vector<2x8xf32>
    %c0_11 = arith.constant 0 : index
    %c0_12 = arith.constant 0 : index
    %31 = vector.load %arg3[%c0_11, %c0_12] : memref<2x8xf32, #tpu.memory_space<vmem>>, vector<2x8xf32>
    %32 = vector.broadcast %29 : vector<64x1xf32> to vector<64x8xf32>
    %33 = arith.mulf %15, %32 : vector<64x8xf32>
    %34 = vector.extract_strided_slice %30 {offsets = [0, 0], sizes = [1, 8], strides = [1, 1]} : vector<2x8xf32> to vector<1x8xf32>
    %35 = vector.broadcast %34 : vector<1x8xf32> to vector<64x8xf32>
    %36 = arith.mulf %33, %35 : vector<64x8xf32>
    %37 = vector.extract_strided_slice %31 {offsets = [0, 0], sizes = [1, 8], strides = [1, 1]} : vector<2x8xf32> to vector<1x8xf32>
    %38 = vector.broadcast %37 : vector<1x8xf32> to vector<64x8xf32>
    %39 = arith.addf %36, %38 : vector<64x8xf32>
    %40 = vector.broadcast %29 : vector<64x1xf32> to vector<64x8xf32>
    %41 = arith.mulf %17, %40 : vector<64x8xf32>
    %42 = vector.extract_strided_slice %30 {offsets = [1, 0], sizes = [1, 8], strides = [1, 1]} : vector<2x8xf32> to vector<1x8xf32>
    %43 = vector.broadcast %42 : vector<1x8xf32> to vector<64x8xf32>
    %44 = arith.mulf %41, %43 : vector<64x8xf32>
    %45 = vector.extract_strided_slice %31 {offsets = [1, 0], sizes = [1, 8], strides = [1, 1]} : vector<2x8xf32> to vector<1x8xf32>
    %46 = vector.broadcast %45 : vector<1x8xf32> to vector<64x8xf32>
    %47 = arith.addf %44, %46 : vector<64x8xf32>
    %c0_13 = arith.constant 0 : index
    %c0_14 = arith.constant 0 : index
    %c0_15 = arith.constant 0 : index
    %48 = vector.load %arg4[%c0_13, %c0_14, %c0_15] : memref<2x8x8xf32, #tpu.memory_space<vmem>>, vector<1x8x8xf32>
    %49 = vector.shape_cast %48 : vector<1x8x8xf32> to vector<8x8xf32>
    %cst_16 = arith.constant dense<0.000000e+00> : vector<64x8xf32>
    %50 = tpu.matmul %39, %49, %cst_16 {dimension_numbers = #tpu.dot_dimension_numbers<[1], [0], [0], [1], [0, 0, 1, 1], [], []>} : vector<64x8xf32>, vector<8x8xf32>, vector<64x8xf32> -> vector<64x8xf32>
    %c1 = arith.constant 1 : index
    %c0_17 = arith.constant 0 : index
    %c0_18 = arith.constant 0 : index
    %51 = vector.load %arg4[%c1, %c0_17, %c0_18] : memref<2x8x8xf32, #tpu.memory_space<vmem>>, vector<1x8x8xf32>
    %52 = vector.shape_cast %51 : vector<1x8x8xf32> to vector<8x8xf32>
    %cst_19 = arith.constant dense<0.000000e+00> : vector<64x8xf32>
    %53 = tpu.matmul %47, %52, %cst_19 {dimension_numbers = #tpu.dot_dimension_numbers<[1], [0], [0], [1], [0, 0, 1, 1], [], []>} : vector<64x8xf32>, vector<8x8xf32>, vector<64x8xf32> -> vector<64x8xf32>
    %54 = arith.addf %50, %53 : vector<64x8xf32>
    %55 = vector.shape_cast %54 : vector<64x8xf32> to vector<8x8x8xf32>
    %c0_20 = arith.constant 0 : index
    %c0_21 = arith.constant 0 : index
    %c0_22 = arith.constant 0 : index
    %56 = vector.load %arg5[%c0_20, %c0_21, %c0_22] : memref<8x8x8xf32, #tpu.memory_space<vmem>>, vector<8x8x8xf32>
    tpu.vector_store %arg5[%c0_20, %c0_21, %c0_22], %55 {strides = array<i32>} : memref<8x8x8xf32, #tpu.memory_space<vmem>>, vector<8x8x8xf32>,
    return
  }
  func.func @transform_0(%arg0: i32) -> (i32, i32, i32, i32) {
    %c0_i32 = arith.constant 0 : i32
    %c0_i32_0 = arith.constant 0 : i32
    %c0_i32_1 = arith.constant 0 : i32
    %c0_i32_2 = arith.constant 0 : i32
    return %arg0, %c0_i32, %c0_i32_0, %c0_i32_1 : i32, i32, i32, i32
  }
  func.func @transform_1(%arg0: i32) -> (i32, i32) {
    %c0_i32 = arith.constant 0 : i32
    %c0_i32_0 = arith.constant 0 : i32
    %c0_i32_1 = arith.constant 0 : i32
    return %c0_i32, %c0_i32_0 : i32, i32
  }
  func.func @transform_2(%arg0: i32) -> (i32, i32) {
    %c0_i32 = arith.constant 0 : i32
    %c0_i32_0 = arith.constant 0 : i32
    %c0_i32_1 = arith.constant 0 : i32
    return %c0_i32, %c0_i32_0 : i32, i32
  }
  func.func @transform_3(%arg0: i32) -> (i32, i32, i32) {
    %c0_i32 = arith.constant 0 : i32
    %c0_i32_0 = arith.constant 0 : i32
    %c0_i32_1 = arith.constant 0 : i32
    %c0_i32_2 = arith.constant 0 : i32
    return %c0_i32, %c0_i32_0, %c0_i32_1 : i32, i32, i32
  }
  func.func @transform_4(%arg0: i32) -> (i32, i32, i32) {
    %c0_i32 = arith.constant 0 : i32
    %c0_i32_0 = arith.constant 0 : i32
    %c0_i32_1 = arith.constant 0 : i32
    return %arg0, %c0_i32, %c0_i32_0 : i32, i32, i32
  }
}

</mosaic_0001>

<bundles_post_ra>
// kernel: patch_merge.1
= control target key start
LH: loop header
LB: loop body
LE: loop exit
PB: predicated region body
PF: predicated region fallthrough
CT: control target
= control target key end

     0   :  { %9 = vsyncpa [#allocation3], 0  ;;  %s1297_s0 = inlined_call_operand.vmem [shape: f32[16,2,8,8], index: 0, kind: input, shape index: {}]   ;;  %s1298_s1 = inlined_call_operand.vmem [shape: f32[2,8], index: 1, kind: input, shape index: {}]   ;;  %s1299_s2 = inlined_call_operand.vmem [shape: f32[2,8], index: 2, kind: input, shape index: {}]   ;;  %s1300_s3 = inlined_call_operand.vmem [shape: f32[2,8,8], index: 3, kind: input, shape index: {}]   ;;  %s1301_s4 = inlined_call_operand.hbm [shape: f32[16,8,8], index: 4, kind: output, shape index: {}]  }
   0x1   :  { %11 = vsyncpa [#allocation3 + $0x1], 0  ;;  %s922_s15 = smov 0   ;;  %s924_s16 = smov 0  }
   0x2   :  { %s926_s17 = smov 0   ;;  %s928_s18 = smov 0  }
   0x3 LB: > { %s943_s19 = sadd.s32 4294967295, %s893_s18   ;;  %s740_s20 = sadd.s32 4294967294, %s893_s18   ;;  %s893_s18 = sphi %s928_s18, %s1307_s18   ;;  %s889_s17 = sphi %s926_s17, %s1306_s17   ;;  %s885_s16 = sphi %s924_s16, %s1305_s16   ;;  %s881_s15 = sphi %s922_s15, %s1304_s15  }
   0x4   : > { %s947_s21 = sadd.s32 1, %s893_s18   ;;  %s113_s22 = sadd.s32 1, %s889_s17 }
   0x5   : > { %s110_s23 = ssub.s32 %s893_s18, %s947_s21  ;;  %p123_p0 = scmp.ne.s32.totalorder %s889_s17, %s885_s16 }
   0x6   : > { %p111_p1 = scmp.eq.s32.totalorder %s110_s23, 0  ;;  %p124_p2 = scmp.eq.s32.totalorder %s943_s19, 1 }
   0x7   : > { %p129_p3 = scmp.ne.s32.totalorder %s885_s16, %s881_s15  ;;  %p130_p4 = scmp.eq.s32.totalorder %s740_s20, 1 }
   0x8   : > { %s958_s24 = scalar_select %p111_p1, %s889_s17, %s113_s22  }
   0x9   : > { %p960_p5 = por %p124_p2, %p123_p0  ;;  %p964_p6 = por %p130_p4, %p129_p3 }
   0xa   : > { %p743_p7 = scmp.ge.s32.totalorder %s893_s18, 1  ;;  %p167_p8 = scmp.lt.s32.totalorder %s893_s18, 3 }
   0xc   : > { %p168_p9 = pnand %p743_p7, %p167_p8 }
   0xd   : > { %s745_s27 = sshll.u32 (!%p168_p9), %s943_s19, 3  ;;  %s191_s14 = sand.u32 (!%p168_p9), 1, %s885_s16  }
   0xe   : > { %171 = sbr.rel (%p168_p9) target bundleno = 475 (0x1db), region = 36  ;;  %p195_p10 = scmp.lt.s32.totalorder (!%p168_p9), %s745_s27, 15 }
   0xf   : > { %s744_s20 = sshll.u32 (!%p168_p9), %s191_s14, 6  ;;  %s771_s23 = sshll.u32 (!%p168_p9), %s943_s19, 6 }
  0x10   : > { %s1245_s22 = scalar_lea.vmem (!%p168_p9), [#allocation2], %s744_s20  ;;  %s674_s29 = scalar_lea.hbm (!%p168_p9), %s1301_s4, %s771_s23 }
  0x11   : > { %s675_s30 = sshll.u32 (!%p168_p9), %s1245_s22, 4  ;;  %s663_s19 = scalar_lea.sflag (!%p168_p9), [#allocation3], %s191_s14  ;;  %s676_s30 = int_to_ptr.vmem [resolvable:$true] %s675_s30 }
  0x12   : > { %s851_s10 = scalar_lea.hbm (!%p168_p9), %s1301_s4, 128 }
  0x13   : > { %s1309_s27 = smov (!%p195_p10, %s745_s27), 15  ;;  %vm218_vm0 = vcmask 64512  }
  0x14   : > { %s770_s28 = sshll.u32 %s1309_s27, 4 }
  0x15   : > { %s974_s5 = scalar_lea.vmem %s1297_s0, %s770_s28 }
  0x16   : > { %v210_v0 = vld [vmem:[%s974_s5 + $0x40] sm:$0xff]  ;;  %v979_v2 = vld [vmem:[%s974_s5 + $0x50] sm:$0xff]  ;;  %v211_v6 = vld [vmem:[%s974_s5 + $0x48] sm:$0xff] }
  0x17   : > { %v202_v1 = vld [vmem:[%s974_s5] sm:$0xff]  ;;  %v231_v3 = vsel %vm218_vm0, %v210_v0, 0.0  ;;  %v234_v5 = vsel %vm218_vm0, %v979_v2, 0.0  ;;  %v203_v7 = vld [vmem:[%s974_s5 + $0x8] sm:$0xff]  ;;  %v988_v8 = vld [vmem:[%s974_s5 + $0x58] sm:$0xff]  ;;  %v255_v9 = vsel %vm218_vm0, %v211_v6, 0.0 }
  0x18   : > { %v219_v4 = vsel %vm218_vm0, %v202_v1, 0.0  ;;  %232 = vadd.xlane.f32.xlu0 %v231_v3  ;;  %235 = vadd.xlane.f32.xlu2 %v234_v5  ;;  %v243_v10 = vsel %vm218_vm0, %v203_v7, 0.0  ;;  %v258_v11 = vsel %vm218_vm0, %v988_v8, 0.0  ;;  %v995_v12 = vld [vmem:[%s974_s5 + $0x10] sm:$0xff]  ;;  %v998_v13 = vld [vmem:[%s974_s5 + $0x18] sm:$0xff]  ;;  %v1001_v14 = vld [vmem:[%s974_s5 + $0x60] sm:$0xff] }
  0x19   : > { %220 = vadd.xlane.f32.xlu1 %v219_v4  ;;  %v222_v15 = vsel %vm218_vm0, %v995_v12, 0.0  ;;  %v246_v16 = vsel %vm218_vm0, %v998_v13, 0.0  ;;  %v237_v17 = vsel %vm218_vm0, %v1001_v14, 0.0  ;;  %v1010_v18 = vld [vmem:[%s974_s5 + $0x68] sm:$0xff]  ;;  %v1013_v19 = vld [vmem:[%s974_s5 + $0x20] sm:$0xff]  ;;  %v1025_v24 = vld [vmem:[%s974_s5 + $0x70] sm:$0xff] }
  0x1a   : > { %v1016_v20 = vld [vmem:[%s974_s5 + $0x28] sm:$0xff]  ;;  %v261_v21 = vsel %vm218_vm0, %v1010_v18, 0.0  ;;  %v225_v22 = vsel %vm218_vm0, %v1013_v19, 0.0  ;;  %v1028_v25 = vld [vmem:[%s974_s5 + $0x78] sm:$0xff]  ;;  %v1031_v26 = vld [vmem:[%s974_s5 + $0x30] sm:$0xff]  ;;  %v240_v27 = vsel %vm218_vm0, %v1025_v24, 0.0 }
  0x1b   : > { %v249_v23 = vsel %vm218_vm0, %v1016_v20, 0.0  ;;  %v264_v28 = vsel %vm218_vm0, %v1028_v25, 0.0  ;;  %v228_v29 = vsel %vm218_vm0, %v1031_v26, 0.0  ;;  %v1040_v30 = vld [vmem:[%s974_s5 + $0x38] sm:$0xff]  ;;  %s677_s5 = sshll.u32 %s674_s29, 4  ;;  %s678_s5 = int_to_ptr.hbm [resolvable:$true] %s677_s5 }
  0x1c   : > { %v252_v31 = vsel %vm218_vm0, %v1040_v30, 0.0  ;;  %s845_s6 = sshra.s32 %s678_s5, 4  ;;  %s846_s6 = int_to_ptr.hbm [resolvable:$true] %s845_s6 }
  0x1d   : > { %s847_s7 = scalar_lea.hbm %s846_s6, 64  ;;  %p852_p0 = scmp.lt.s32.totalorder %s846_s6, %s1301_s4 }
  0x1e   : > { %p848_p11 = scmp.ne.s32.totalorder %s846_s6, %s847_s7  ;;  %p853_p1 = scmp.lt.s32.totalorder %s851_s10, %s847_s7 }
  0x20   : > { %256 = vadd.xlane.f32.xlu0 %v255_v9  ;;  %259 = vadd.xlane.f32.xlu2 %v258_v11  ;;  %p849_p12 = pnand %p848_p11, %p960_p5  ;;  %p854_p2 = por %p853_p1, %p852_p0 }
  0x21   : > { %244 = vadd.xlane.f32.xlu1 %v243_v10 }
  0x22   : > { %p850_p13 = pneg %p849_p12 }
  0x24   : > { %p855_p3 = pnand %p854_p2, %p850_p13 }
  0x28   : > { %223 = vadd.xlane.f32.xlu0 %v222_v15  ;;  %238 = vadd.xlane.f32.xlu2 %v237_v17 }
  0x29   : > { %247 = vadd.xlane.f32.xlu1 %v246_v16 }
  0x30   : > { %262 = vadd.xlane.f32.xlu0 %v261_v21  ;;  %250 = vadd.xlane.f32.xlu2 %v249_v23 }
  0x31   : > { %226 = vadd.xlane.f32.xlu1 %v225_v22 }
  0x38   : > { %241 = vadd.xlane.f32.xlu0 %v240_v27  ;;  %229 = vadd.xlane.f32.xlu2 %v228_v29 }
  0x39   : > { %265 = vadd.xlane.f32.xlu1 %v264_v28 }
  0x40   : > { %253 = vadd.xlane.f32.xlu0 %v252_v31 }
  0x8b   : > { %v233_v32 = vpop.xlane.xlu0 %232  ;;  %v236_v34 = vpop.xlane.xlu2 %235 }
  0x8c   : > { %v221_v33 = vpop.xlane.xlu1 %220 }
  0x93   : > { %v257_v35 = vpop.xlane.xlu0 %256  ;;  %v260_v39 = vpop.xlane.xlu2 %259 }
  0x94   : > { %v245_v36 = vpop.xlane.xlu1 %244  ;;  %v271_v37 = vadd.f32 %v257_v35, %v233_v32  ;;  %v272_v40 = vadd.f32 %v260_v39, %v236_v34 }
  0x95   : > { %v267_v38 = vadd.f32 %v245_v36, %v221_v33 }
  0x96   : > { %v279_v41 = vmul.f32 0.0625, %v271_v37  ;;  %v280_v43 = vmul.f32 0.0625, %v272_v40 }
  0x97   : > { %v275_v42 = vmul.f32 0.0625, %v267_v38 }
  0x98   : > { %v1044_v44 = vsub.f32 %v210_v0, %v279_v41  ;;  %v1046_v45 = vsub.f32 %v211_v6, %v279_v41  ;;  %v1059_v51 = vsub.f32 %v979_v2, %v280_v43  ;;  %v1065_v59 = vsub.f32 %v988_v8, %v280_v43 }
  0x99   : > { %v1048_v46 = vsub.f32 %v202_v1, %v275_v42  ;;  %v1056_v50 = vsub.f32 %v203_v7, %v275_v42 }
  0x9a   : > { %v335_v47 = vmul.f32 %v1046_v45, %v1046_v45  ;;  %v303_v48 = vmul.f32 %v1044_v44, %v1044_v44  ;;  %v304_v61 = vmul.f32 %v1059_v51, %v1059_v51  ;;  %v336_v63 = vmul.f32 %v1065_v59, %v1065_v59 }
  0x9b   : > { %v299_v49 = vmul.f32 %v1048_v46, %v1048_v46  ;;  %v224_v52 = vpop.xlane.xlu0 %223  ;;  %v239_v57 = vpop.xlane.xlu2 %238  ;;  %v331_v62 = vmul.f32 %v1056_v50, %v1056_v50 }
  0x9c   : > { %v248_v53 = vpop.xlane.xlu1 %247  ;;  %v351_v54 = vsel %vm218_vm0, %v335_v47, 0.0  ;;  %v319_v55 = vsel %vm218_vm0, %v303_v48, 0.0  ;;  %v322_v5 = vsel %vm218_vm0, %v304_v61, 0.0  ;;  %v354_v8 = vsel %vm218_vm0, %v336_v63, 0.0 }
  0x9d   : > { %v307_v56 = vsel %vm218_vm0, %v299_v49, 0.0  ;;  %v268_v58 = vadd.f32 %v248_v53, %v224_v52  ;;  %352 = vadd.xlane.f32.xlu2 %v351_v54  ;;  %320 = vadd.xlane.f32.xlu1 %v319_v55  ;;  %v339_v6 = vsel %vm218_vm0, %v331_v62, 0.0  ;;  %v521_v54 = vld [vmem:[%s1300_s3] sm:$0xff] }
  0x9e   : > { %308 = vadd.xlane.f32.xlu0 %v307_v56  ;;  %773 = vmatpush.msra.mxu3 %v521_v54 }
  0x9f   : > { %v276_v60 = vmul.f32 0.0625, %v268_v58  ;;  %628 = vmatpush.msra.mxu1 %v521_v54 }
  0xa1   : > { %v1074_v0 = vsub.f32 %v995_v12, %v276_v60  ;;  %v1077_v1 = vsub.f32 %v998_v13, %v276_v60 }
  0xa3   : > { %v263_v2 = vpop.xlane.xlu0 %262  ;;  %v251_v7 = vpop.xlane.xlu2 %250  ;;  %v332_v11 = vmul.f32 %v1077_v1, %v1077_v1  ;;  %v300_v12 = vmul.f32 %v1074_v0, %v1074_v0 }
  0xa4   : > { %v227_v3 = vpop.xlane.xlu1 %226  ;;  %v273_v4 = vadd.f32 %v263_v2, %v239_v57 }
  0xa5   : > { %323 = vadd.xlane.f32.xlu2 %v322_v5  ;;  %340 = vadd.xlane.f32.xlu1 %v339_v6  ;;  %v269_v9 = vadd.f32 %v251_v7, %v227_v3  ;;  %v342_v21 = vsel %vm218_vm0, %v332_v11, 0.0  ;;  %v310_v22 = vsel %vm218_vm0, %v300_v12, 0.0 }
  0xa6   : > { %v281_v10 = vmul.f32 0.0625, %v273_v4  ;;  %355 = vadd.xlane.f32.xlu0 %v354_v8 }
  0xa7   : > { %v277_v13 = vmul.f32 0.0625, %v269_v9 }
  0xa8   : > { %v1087_v15 = vsub.f32 %v1001_v14, %v281_v10  ;;  %v1100_v29 = vsub.f32 %v1010_v18, %v281_v10 }
  0xa9   : > { %v1090_v16 = vsub.f32 %v1013_v19, %v277_v13  ;;  %v1097_v23 = vsub.f32 %v1016_v20, %v277_v13 }
  0xaa   : > { %v305_v17 = vmul.f32 %v1087_v15, %v1087_v15  ;;  %v337_v20 = vmul.f32 %v1100_v29, %v1100_v29 }
  0xab   : > { %v242_v27 = vpop.xlane.xlu0 %241  ;;  %v301_v32 = vmul.f32 %v1090_v16, %v1090_v16  ;;  %v333_v33 = vmul.f32 %v1097_v23, %v1097_v23  ;;  %v230_v34 = vpop.xlane.xlu2 %229 }
  0xac   : > { %v266_v28 = vpop.xlane.xlu1 %265  ;;  %v325_v14 = vsel %vm218_vm0, %v305_v17, 0.0  ;;  %v357_v39 = vsel %vm218_vm0, %v337_v20, 0.0 }
  0xad   : > { %v274_v31 = vadd.f32 %v266_v28, %v242_v27  ;;  %343 = vadd.xlane.f32.xlu2 %v342_v21  ;;  %311 = vadd.xlane.f32.xlu1 %v310_v22  ;;  %v313_v36 = vsel %vm218_vm0, %v301_v32, 0.0  ;;  %v345_v37 = vsel %vm218_vm0, %v333_v33, 0.0  ;;  %v468_v32 = vld [vmem:[%s1299_s2] sm:$0x3] }
  0xae   : > { %326 = vadd.xlane.f32.xlu0 %v325_v14  ;;  %v467_v14 = vld [vmem:[%s1298_s1] sm:$0x3] }
  0xaf   : > { %v282_v19 = vmul.f32 0.0625, %v274_v31 }
  0xb1   : > { %v1110_v18 = vsub.f32 %v1025_v24, %v282_v19  ;;  %v1113_v35 = vsub.f32 %v1028_v25, %v282_v19 }
  0xb3   : > { %v254_v38 = vpop.xlane.xlu0 %253  ;;  %v338_v42 = vmul.f32 %v1113_v35, %v1113_v35  ;;  %v306_v24 = vmul.f32 %v1110_v18, %v1110_v18 }
  0xb4   : > { %v270_v40 = vadd.f32 %v254_v38, %v230_v34  ;;  %v1153_v38 = vperm.slane %v467_v14, 0 }
  0xb5   : > { %358 = vadd.xlane.f32.xlu1 %v357_v39  ;;  %314 = vadd.xlane.f32.xlu2 %v313_v36  ;;  %v360_v47 = vsel %vm218_vm0, %v338_v42, 0.0  ;;  %v328_v48 = vsel %vm218_vm0, %v306_v24, 0.0  ;;  %v1155_v24 = vperm.slane %v468_v32, 1 }
  0xb6   : > { %346 = vadd.xlane.f32.xlu0 %v345_v37  ;;  %v278_v41 = vmul.f32 0.0625, %v270_v40  ;;  %v1151_v37 = vperm.slane %v467_v14, 1 }
  0xb8   : > { %v1123_v25 = vsub.f32 %v1031_v26, %v278_v41  ;;  %v1126_v43 = vsub.f32 %v1040_v30, %v278_v41  ;;  %v748_v30 = vld [vmem:[%s1300_s3 + $0x8] sm:$0xff] }
  0xb9   : > { %772 = vmatpush.msra.mxu2 %v748_v30  ;;  %563 = vmatpush.msra.mxu0 %v748_v30 }
  0xba   : > { %v302_v49 = vmul.f32 %v1123_v25, %v1123_v25  ;;  %v334_v53 = vmul.f32 %v1126_v43, %v1126_v43 }
  0xbc   : > { %v316_v52 = vsel %vm218_vm0, %v302_v49, 0.0  ;;  %v348_v26 = vsel %vm218_vm0, %v334_v53, 0.0 }
  0xbd   : > { %361 = vadd.xlane.f32.xlu2 %v360_v47  ;;  %329 = vadd.xlane.f32.xlu1 %v328_v48  ;;  %v1157_v47 = vperm.slane %v468_v32, 0 }
  0xbe   : > { %317 = vadd.xlane.f32.xlu0 %v316_v52 }
  0xc5   : > { %349 = vadd.xlane.f32.xlu1 %v348_v26 }
 0x110   : > { %v353_v55 = vpop.xlane.xlu2 %352  ;;  %v321_v56 = vpop.xlane.xlu1 %320 }
 0x111   : > { %v309_v57 = vpop.xlane.xlu0 %308  ;;  %v367_v58 = vadd.f32 %v353_v55, %v321_v56 }
 0x113   : > { %v375_v60 = vmul.f32 0.0625, %v367_v58 }
 0x115   : > { %v383_v61 = vadd.f32 1e-05, %v375_v60 }
 0x117   : > { %815 = vrsqrt.f32 %v383_v61  ;;  %vm433_vm2 = vweird.f32 %v383_v61 }
 0x118   : > { %v324_v62 = vpop.xlane.xlu2 %323  ;;  %v341_v63 = vpop.xlane.xlu1 %340 }
 0x119   : > { %v356_v2 = vpop.xlane.xlu0 %355  ;;  %v363_v3 = vadd.f32 %v341_v63, %v309_v57 }
 0x11a   : > { %v368_v4 = vadd.f32 %v356_v2, %v324_v62 }
 0x11b   : > { %v371_v5 = vmul.f32 0.0625, %v363_v3 }
 0x11c   : > { %v376_v6 = vmul.f32 0.0625, %v368_v4 }
 0x11d   : > { %v816_v7 = vpop.eup %815  ;;  %v379_v8 = vadd.f32 1e-05, %v371_v5 }
 0x11e   : > { %v428_v9 = vmul.f32 %v816_v7, %v383_v61  ;;  %v384_v10 = vadd.f32 1e-05, %v376_v6  ;;  %vm434_vm1 = vweird.f32 %v816_v7 }
 0x11f   : > { %817 = vrsqrt.f32 %v379_v8  ;;  %vm435_vm3 = vmor %vm433_vm2, %vm434_vm1  ;;  %vm393_vm6 = vweird.f32 %v379_v8 }
 0x120   : > { %v429_v11 = vmul.f32 %v816_v7, %v428_v9  ;;  %819 = vrsqrt.f32 %v384_v10  ;;  %v344_v12 = vpop.xlane.xlu2 %343  ;;  %v312_v13 = vpop.xlane.xlu1 %311  ;;  %vm443_vm7 = vweird.f32 %v384_v10 }
 0x121   : > { %v327_v17 = vpop.xlane.xlu0 %326  ;;  %v364_v21 = vadd.f32 %v344_v12, %v312_v13 }
 0x122   : > { %v430_v22 = vmul.f32 0.5, %v429_v11 }
 0x123   : > { %v372_v27 = vmul.f32 0.0625, %v364_v21 }
 0x124   : > { %v431_v28 = vsub.f32 1.5, %v430_v22 }
 0x125   : > { %v818_v31 = vpop.eup %817  ;;  %v1145_v19 = vadd.f32 1e-05, %v372_v27 }
 0x126   : > { %v820_v33 = vpop.eup %819  ;;  %v432_v20 = vmul.f32 %v816_v7, %v431_v28  ;;  %v388_v34 = vmul.f32 %v818_v31, %v379_v8  ;;  %vm394_vm5 = vweird.f32 %v818_v31 }
 0x127   : > { %v438_v36 = vmul.f32 %v820_v33, %v384_v10  ;;  %821 = vrsqrt.f32 %v1145_v19  ;;  %vm444_vm4 = vweird.f32 %v820_v33  ;;  %vm395_vm8 = vmor %vm393_vm6, %vm394_vm5  ;;  %vm403_vm11 = vweird.f32 %v1145_v19 }
 0x128   : > { %v389_v39 = vmul.f32 %v818_v31, %v388_v34  ;;  %v315_v40 = vpop.xlane.xlu2 %314  ;;  %v359_v41 = vpop.xlane.xlu1 %358  ;;  %v436_v42 = vsel %vm435_vm3, %v816_v7, %v432_v20  ;;  %vm445_vm9 = vmor %vm443_vm7, %vm444_vm4 }
 0x129   : > { %v439_v48 = vmul.f32 %v820_v33, %v438_v36  ;;  %v347_v49 = vpop.xlane.xlu0 %346  ;;  %v369_v52 = vadd.f32 %v359_v41, %v327_v17  ;;  %v499_v53 = vmul.f32 %v436_v42, %v1046_v45  ;;  %v473_v26 = vmul.f32 %v436_v42, %v1044_v44 }
 0x12a   : > { %v390_v30 = vmul.f32 0.5, %v389_v39  ;;  %v365_v54 = vadd.f32 %v347_v49, %v315_v40 }
 0x12b   : > { %v440_v55 = vmul.f32 0.5, %v439_v48  ;;  %v377_v56 = vmul.f32 0.0625, %v369_v52  ;;  %v508_v57 = vmul.f32 %v1151_v37, %v499_v53  ;;  %v482_v58 = vmul.f32 %v1153_v38, %v473_v26 }
 0x12c   : > { %v391_v60 = vsub.f32 1.5, %v390_v30  ;;  %v373_v61 = vmul.f32 0.0625, %v365_v54 }
 0x12d   : > { %v822_v62 = vpop.eup %821  ;;  %v441_v63 = vsub.f32 1.5, %v440_v55  ;;  %v1163_v2 = vadd.f32 1e-05, %v377_v56  ;;  %v517_v45 = vadd.f32 %v1155_v24, %v508_v57  ;;  %v491_v44 = vadd.f32 %v1157_v47, %v482_v58 }
 0x12e   : > { %v392_v3 = vmul.f32 %v818_v31, %v391_v60  ;;  %v398_v4 = vmul.f32 %v822_v62, %v1145_v19  ;;  %v1168_v5 = vadd.f32 1e-05, %v373_v61  ;;  %vm404_vm10 = vweird.f32 %v822_v62 }
 0x12f   : > { %v442_v6 = vmul.f32 %v820_v33, %v441_v63  ;;  %823 = vrsqrt.f32 %v1163_v2  ;;  %753 = vmatmul.msk.f32.vlgmr.msra.gmra.mxu2 %vm218_vm0, %v517_v45  ;;  %761 = vmatmul.msk.f32.vlgmr.msra.gmra.mxu3 %vm218_vm0, %v491_v44  ;;  %vm405_vm12 = vmor %vm403_vm11, %vm404_vm10  ;;  %vm453_vm15 = vweird.f32 %v1163_v2 }
 0x130   : > { %v399_v7 = vmul.f32 %v822_v62, %v398_v4  ;;  %825 = vrsqrt.f32 %v1168_v5  ;;  %v362_v9 = vpop.xlane.xlu2 %361  ;;  %v330_v8 = vpop.xlane.xlu1 %329  ;;  %v396_v11 = vsel %vm395_vm8, %v818_v31, %v392_v3  ;;  %vm413_vm1 = vweird.f32 %v1168_v5 }
 0x131   : > { %v370_v12 = vadd.f32 %v362_v9, %v330_v8  ;;  %v495_v13 = vmul.f32 %v396_v11, %v1056_v50  ;;  %v446_v17 = vsel %vm445_vm9, %v820_v33, %v442_v6  ;;  %v469_v10 = vmul.f32 %v396_v11, %v1048_v46  ;;  %v318_v41 = vpop.xlane.xlu0 %317 }
 0x132   : > { %v400_v21 = vmul.f32 0.5, %v399_v7  ;;  %v500_v22 = vmul.f32 %v446_v17, %v1065_v59  ;;  %v474_v27 = vmul.f32 %v446_v17, %v1059_v51 }
 0x133   : > { %v378_v28 = vmul.f32 0.0625, %v370_v12  ;;  %v504_v14 = vmul.f32 %v1151_v37, %v495_v13  ;;  %v478_v32 = vmul.f32 %v1153_v38, %v469_v10 }
 0x134   : > { %v401_v20 = vsub.f32 1.5, %v400_v21  ;;  %v509_v31 = vmul.f32 %v1151_v37, %v500_v22  ;;  %v483_v34 = vmul.f32 %v1153_v38, %v474_v27 }
 0x135   : > { %v824_v50 = vpop.eup %823  ;;  %v1183_v33 = vadd.f32 1e-05, %v378_v28  ;;  %v513_v46 = vadd.f32 %v1155_v24, %v504_v14  ;;  %v487_v59 = vadd.f32 %v1157_v47, %v478_v32 }
 0x136   : > { %v826_v36 = vpop.eup %825  ;;  %v402_v51 = vmul.f32 %v822_v62, %v401_v20  ;;  %v448_v39 = vmul.f32 %v824_v50, %v1163_v2  ;;  %v518_v40 = vadd.f32 %v1155_v24, %v509_v31  ;;  %v492_v49 = vadd.f32 %v1157_v47, %v483_v34 }
 0x137   : > { %v408_v42 = vmul.f32 %v826_v36, %v1168_v5  ;;  %827 = vrsqrt.f32 %v1183_v33  ;;  %749 = vmatmul.msk.f32.vlgmr.msra.gmra.mxu0 %vm218_vm0, %v513_v46  ;;  %757 = vmatmul.msk.f32.vlgmr.msra.gmra.mxu1 %vm218_vm0, %v487_v59  ;;  %vm414_vm13 = vweird.f32 %v826_v36  ;;  %vm454_vm14 = vweird.f32 %v824_v50 }
 0x138   : > { %v449_v48 = vmul.f32 %v824_v50, %v448_v39  ;;  %754 = vmatmul.msk.f32.gmra.mxu2 %vm218_vm0, %v518_v40  ;;  %v350_v19 = vpop.xlane.xlu1 %349  ;;  %v406_v52 = vsel %vm405_vm12, %v822_v62, %v402_v51  ;;  %762 = vmatmul.msk.f32.gmra.mxu3 %vm218_vm0, %v492_v49  ;;  %vm455_vm2 = vmor %vm453_vm15, %vm454_vm14  ;;  %vm463_vm5 = vweird.f32 %v1183_v33 }
 0x139   : > { %v409_v53 = vmul.f32 %v826_v36, %v408_v42  ;;  %v366_v26 = vadd.f32 %v350_v19, %v318_v41  ;;  %v496_v30 = vmul.f32 %v406_v52, %v1077_v1  ;;  %v470_v54 = vmul.f32 %v406_v52, %v1074_v0  ;;  %vm415_vm3 = vmor %vm413_vm1, %vm414_vm13 }
 0x13a   : > { %v450_v55 = vmul.f32 0.5, %v449_v48 }
 0x13b   : > { %v410_v56 = vmul.f32 0.5, %v409_v53  ;;  %v374_v57 = vmul.f32 0.0625, %v366_v26  ;;  %v505_v58 = vmul.f32 %v1151_v37, %v496_v30  ;;  %v479_v60 = vmul.f32 %v1153_v38, %v470_v54 }
 0x13c   : > { %v451_v61 = vsub.f32 1.5, %v450_v55 }
 0x13d   : > { %v828_v63 = vpop.eup %827  ;;  %v411_v62 = vsub.f32 1.5, %v410_v56  ;;  %v382_v45 = vadd.f32 1e-05, %v374_v57  ;;  %v514_v44 = vadd.f32 %v1155_v24, %v505_v58  ;;  %v488_v1 = vadd.f32 %v1157_v47, %v479_v60 }
 0x13e   : > { %v452_v0 = vmul.f32 %v824_v50, %v451_v61  ;;  %v458_v3 = vmul.f32 %v828_v63, %v1183_v33  ;;  %vm464_vm4 = vweird.f32 %v828_v63 }
 0x13f   : > { %v412_v4 = vmul.f32 %v826_v36, %v411_v62  ;;  %829 = vrsqrt.f32 %v382_v45  ;;  %750 = vmatmul.msk.f32.gmra.mxu0 %vm218_vm0, %v514_v44  ;;  %758 = vmatmul.msk.f32.gmra.mxu1 %vm218_vm0, %v488_v1  ;;  %vm465_vm6 = vmor %vm463_vm5, %vm464_vm4  ;;  %vm423_vm8 = vweird.f32 %v382_v45 }
 0x140   : > { %v459_v6 = vmul.f32 %v828_v63, %v458_v3  ;;  %v456_v7 = vsel %vm455_vm2, %v824_v50, %v452_v0 }
 0x141   : > { %v416_v9 = vsel %vm415_vm3, %v826_v36, %v412_v4  ;;  %v501_v8 = vmul.f32 %v456_v7, %v1100_v29  ;;  %v475_v2 = vmul.f32 %v456_v7, %v1087_v15 }
 0x142   : > { %v460_v11 = vmul.f32 0.5, %v459_v6  ;;  %v497_v12 = vmul.f32 %v416_v9, %v1097_v23  ;;  %v471_v5 = vmul.f32 %v416_v9, %v1090_v16 }
 0x143   : > { %v510_v13 = vmul.f32 %v1151_v37, %v501_v8  ;;  %v484_v17 = vmul.f32 %v1153_v38, %v475_v2 }
 0x144   : > { %v461_v10 = vsub.f32 1.5, %v460_v11  ;;  %v506_v21 = vmul.f32 %v1151_v37, %v497_v12  ;;  %v480_v22 = vmul.f32 %v1153_v38, %v471_v5 }
 0x145   : > { %v830_v27 = vpop.eup %829  ;;  %v519_v29 = vadd.f32 %v1155_v24, %v510_v13  ;;  %v493_v15 = vadd.f32 %v1157_v47, %v484_v17 }
 0x146   : > { %v462_v28 = vmul.f32 %v828_v63, %v461_v10  ;;  %v418_v23 = vmul.f32 %v830_v27, %v382_v45  ;;  %v515_v16 = vadd.f32 %v1155_v24, %v506_v21  ;;  %v489_v14 = vadd.f32 %v1157_v47, %v480_v22 }
 0x147   : > { %755 = vmatmul.msk.f32.gmra.mxu2 %vm218_vm0, %v519_v29  ;;  %763 = vmatmul.msk.f32.gmra.mxu3 %vm218_vm0, %v493_v15  ;;  %vm424_vm7 = vweird.f32 %v830_v27 }
 0x148   : > { %v419_v32 = vmul.f32 %v830_v27, %v418_v23  ;;  %751 = vmatmul.msk.f32.gmra.mxu0 %vm218_vm0, %v515_v16  ;;  %v466_v20 = vsel %vm465_vm6, %v828_v63, %v462_v28  ;;  %759 = vmatmul.msk.f32.gmra.mxu1 %vm218_vm0, %v489_v14  ;;  %vm425_vm9 = vmor %vm423_vm8, %vm424_vm7 }
 0x149   : > { %v502_v31 = vmul.f32 %v466_v20, %v1113_v35  ;;  %v476_v34 = vmul.f32 %v466_v20, %v1110_v18 }
 0x14a   : > { %v420_v50 = vmul.f32 0.5, %v419_v32 }
 0x14b   : > { %v511_v33 = vmul.f32 %v1151_v37, %v502_v31  ;;  %v485_v46 = vmul.f32 %v1153_v38, %v476_v34 }
 0x14c   : > { %v421_v59 = vsub.f32 1.5, %v420_v50 }
 0x14d   : > { %v520_v36 = vadd.f32 %v1155_v24, %v511_v33  ;;  %v494_v51 = vadd.f32 %v1157_v47, %v485_v46 }
 0x14e   : > { %v422_v39 = vmul.f32 %v830_v27, %v421_v59 }
 0x14f   : > { %756 = vmatmul.msk.f32.gmra.mxu2 %vm218_vm0, %v520_v36  ;;  %764 = vmatmul.msk.f32.gmra.mxu3 %vm218_vm0, %v494_v51 }
 0x150   : > { %v426_v18 = vsel %vm425_vm9, %v830_v27, %v422_v39 }
 0x151   : > { %v498_v35 = vmul.f32 %v426_v18, %v1126_v43  ;;  %v472_v40 = vmul.f32 %v426_v18, %v1123_v25 }
 0x153   : > { %v507_v41 = vmul.f32 %v1151_v37, %v498_v35  ;;  %v481_v42 = vmul.f32 %v1153_v38, %v472_v40 }
 0x155   : > { %v516_v48 = vadd.f32 %v1155_v24, %v507_v41  ;;  %v490_v49 = vadd.f32 %v1157_v47, %v481_v42 }
 0x157   : > { %752 = vmatmul.msk.f32.gmra.mxu0 %vm218_vm0, %v516_v48  ;;  %760 = vmatmul.msk.f32.gmra.mxu1 %vm218_vm0, %v490_v49 }
 0x1b2   : > { %v577_v19 = vpop.f32.mrf.mxu2  ;;  %v642_v52 = vpop.f32.mrf.mxu3 }
 0x1b3   : > { %v643_v43 = vadd.f32 %v642_v52, %v577_v19 }
 0x1b4   : > { %v565_v53 = vpop.f32.mrf.mxu0  ;;  %v630_v25 = vpop.f32.mrf.mxu1 }
 0x1b5   : > { %658 = vst.msk [vmem:[%s1245_s22 + $0x20] sm:$0xff] %vm218_vm0, %v643_v43  ;;  %v631_v37 = vadd.f32 %v630_v25, %v565_v53 }
 0x1b7   : > { %654 = vst.msk [vmem:[%s1245_s22] sm:$0xff] %vm218_vm0, %v631_v37 }
 0x1bb   : > { %v580_v38 = vpop.f32.mrf.mxu2  ;;  %v645_v26 = vpop.f32.mrf.mxu3 }
 0x1bc   : > { %v568_v24 = vpop.f32.mrf.mxu0  ;;  %v633_v47 = vpop.f32.mrf.mxu1  ;;  %v646_v54 = vadd.f32 %v645_v26, %v580_v38 }
 0x1bd   : > { %v634_v30 = vadd.f32 %v633_v47, %v568_v24 }
 0x1be   : > { %659 = vst.msk [vmem:[%s1245_s22 + $0x28] sm:$0xff] %vm218_vm0, %v646_v54 }
 0x1bf   : > { %655 = vst.msk [vmem:[%s1245_s22 + $0x8] sm:$0xff] %vm218_vm0, %v634_v30 }
 0x1c5   : > { %v571_v55 = vpop.f32.mrf.mxu0  ;;  %v636_v56 = vpop.f32.mrf.mxu1 }
 0x1c6   : > { %v637_v57 = vadd.f32 %v636_v56, %v571_v55 }
 0x1c8   : > { %656 = vst.msk [vmem:[%s1245_s22 + $0x10] sm:$0xff] %vm218_vm0, %v637_v57 }
 0x1ca   : > { %v583_v58 = vpop.f32.mrf.mxu2  ;;  %v648_v60 = vpop.f32.mrf.mxu3 }
 0x1cb   : > { %v649_v61 = vadd.f32 %v648_v60, %v583_v58 }
 0x1cd   : > { %660 = vst.msk [vmem:[%s1245_s22 + $0x30] sm:$0xff] %vm218_vm0, %v649_v61 }
 0x1d2   : > { %v586_v63 = vpop.f32.mrf.mxu2  ;;  %v651_v62 = vpop.f32.mrf.mxu3 }
 0x1d3   : > { %v652_v45 = vadd.f32 %v651_v62, %v586_v63 }
 0x1d4   : > { %v574_v44 = vpop.f32.mrf.mxu0  ;;  %v639_v1 = vpop.f32.mrf.mxu1 }
 0x1d5   : > { %661 = vst.msk [vmem:[%s1245_s22 + $0x38] sm:$0xff] %vm218_vm0, %v652_v45  ;;  %v640_v0 = vadd.f32 %v639_v1, %v574_v44 }
 0x1d7   : > { %657 = vst.msk [vmem:[%s1245_s22 + $0x18] sm:$0xff] %vm218_vm0, %v640_v0 }
 0x1d8   : > { %858 = shalt.err (!%p855_p3)
}
 0x1d9   : > { %s895_s13 = smov 128   ;;  %s896_s14 = smov 8  }
 0x1da   : > { %774 = dma.vmem_to_hbm [thread:$0]  (%p960_p5), %s676_s30, 1024, %s678_s5, %s663_s19, %s895_s13, %s895_s13, %s896_s14  }
 0x1db PF: > { %p780_p4 = scmp.ge.s32.totalorder %s893_s18, 2  ;;  %s692_s20 = sand.u32 1, %s881_s15  }
 0x1dc   : > { %s693_s22 = scalar_lea.sflag [#allocation3], %s692_s20 }
 0x1dd   : > { %p777_p7 = pnand %p780_p4, %p964_p6 }
 0x1df   : > { %p778_p8 = pneg %p777_p7 }
 0x1e1   : > { %876 = dma.done.wait (%p778_p8), %s693_s22, 1024  }
 0x1e2   : > { %878 = vsyncadd (%p778_p8), %s693_s22, 4294966272  ;;  %p14_p9 = scmp.ge.s32.totalorder %s947_s21, 4   ;;  %s1304_s15 = smov %s885_s16 }
 0x1e3   : > { %s1305_s16 = smov %s889_s17  ;;  %s1306_s17 = smov %s958_s24 }
 0x1e4   : > { %s1307_s18 = smov %s947_s21  ;;  %16 = sbr.rel (!%p14_p9) target bundleno = 3 (0x3), region = 72 }
 0x1e9   :  { %699 = vsyncpa [#allocation3], 1 }
 0x1ea   :  { %701 = vsyncpa [#allocation3 + $0x1], 1 }

</bundles_post_ra>
